<compile_context>
chip_gen: v5e
topology: v5e:2x2
jax: 0.10.0
libtpu: 0.0.40
codegen_flags: <defaults>
</compile_context>

<pallas_src>
import functools

import jax
import jax.numpy as jnp
from jax.experimental import pallas as pl
from jax.experimental.pallas import tpu as pltpu


def _embed_kernel(patches_ref, w_ref, pos_ref, out_ref):
    # patches_ref: (1, TM, K) bf16 -- row i is the im2col patch feeding output
    #              sequence row i of this tile (global row 0 is all zeros, so
    #              the cls row gets no matmul contribution).
    # w_ref:       (K, dim)   bf16 -- flattened conv weight, VMEM resident
    #              (constant block index -> no re-DMA across grid steps).
    # pos_ref:     (TM, dim)  f32  -- position table with conv bias folded into
    #              patch rows and cls_token folded into row 0; block index is
    #              constant across the inner batch axis -> no re-DMA.
    # out_ref:     (1, TM, dim)    -- bf16 by default (cast on store only).
    proj = jnp.dot(patches_ref[0], w_ref[...],
                   preferred_element_type=jnp.float32)        # MXU, f32 accum
    out_ref[0] = (proj + pos_ref[...]).astype(out_ref.dtype)  # single VPU pass


def dino2_embeddings(pixel_values, conv_w, conv_b, cls_token, pos_emb,
                     patch_size, tile_m=512, out_dtype=jnp.bfloat16):
    """pixel_values: (B, C, H, W) NCHW (any float dtype; cast to bf16 inside).
    conv_w: (dim, C, P, P), conv_b: (dim,), cls_token: (1, 1, dim),
    pos_emb: (1, nP+1, dim). Returns (B, nP+1, dim) in out_dtype."""
    B, C, H, W = pixel_values.shape
    dim = conv_w.shape[0]
    P = patch_size
    gh, gw = H // P, W // P
    nP = gh * gw
    S = nP + 1                      # cls + patches
    K = C * P * P                   # contraction dim (full-dim block -> no pad)

    # --- glue: im2col in bf16, front-pad one zero row for the cls slot ------
    # TODO(synk): fuse this rearrange into the kernel (read raw NCHW pixel
    # tiles via pl.ANY + manual DMA, rearrange in VMEM) to remove this HBM
    # round trip entirely.
    x = pixel_values.astype(jnp.bfloat16)
    x = x.reshape(B, C, gh, P, gw, P).transpose(0, 2, 4, 1, 3, 5)
    x = x.reshape(B, nP, K)
    patches = jnp.pad(x, ((0, 0), (1, 0), (0, 0)))              # (B, S, K)

    # flattened conv weight: conv over a patch == patch_vec @ W^T.
    w_flat = conv_w.reshape(dim, K).T.astype(jnp.bfloat16)      # (K, dim)

    # batch-invariant position table with bias / cls folded in (kept f32 for
    # an exact additive term; its traffic is amortized over the batch axis).
    pos = pos_emb.reshape(S, dim).astype(jnp.float32)
    cls_row = cls_token.reshape(1, dim).astype(jnp.float32) + pos[:1]
    patch_rows = pos[1:] + conv_b.astype(jnp.float32)[None, :]
    pos_tab = jnp.concatenate([cls_row, patch_rows], axis=0)    # (S, dim)

    # sequence tile: full S if small, else tile_m (8-row aligned by caller).
    TM = S if S <= tile_m else tile_m
    # Batch innermost so pos (index (j,0)) and w_flat (index (0,0)) keep the
    # same block index on consecutive steps -> Pallas skips their re-DMA.
    grid = (pl.cdiv(S, TM), B)

    grid_spec = pltpu.PrefetchScalarGridSpec(
        num_scalar_prefetch=0,
        grid=grid,
        in_specs=[
            pl.BlockSpec((1, TM, K), lambda j, b: (b, j, 0)),
            pl.BlockSpec((K, dim), lambda j, b: (0, 0)),     # VMEM resident
            pl.BlockSpec((TM, dim), lambda j, b: (j, 0)),    # resident per j
        ],
        out_specs=pl.BlockSpec((1, TM, dim), lambda j, b: (b, j, 0)),
    )

    return pl.pallas_call(
        _embed_kernel,
        out_shape=jax.ShapeDtypeStruct((B, S, dim), out_dtype),
        grid_spec=grid_spec,
        compiler_params=pltpu.CompilerParams(
            # Outer (sequence-tile) axis splits across v7x's two TensorCores;
            # inner batch axis keeps pos-block constancy within each core.
            dimension_semantics=("parallel", "parallel"),
            vmem_limit_bytes=32 * 1024 * 1024),
    )(patches, w_flat, pos_tab)


def _reference(pixel_values, conv_w, conv_b, cls_token, pos_emb, patch_size):
    # Pure-JAX f32 reference matching the PyTorch forward exactly.
    out = jax.lax.conv_general_dilated(
        pixel_values, conv_w,
        window_strides=(patch_size, patch_size), padding="VALID",
        dimension_numbers=("NCHW", "OIHW", "NCHW"))
    out = out + conv_b[None, :, None, None]
    B, D, gh, gw = out.shape
    x = out.reshape(B, D, gh * gw).transpose(0, 2, 1)   # flatten(2).transpose(1,2)
    cls = jnp.broadcast_to(cls_token, (B, 1, D))
    x = jnp.concatenate([cls, x], axis=1)
    return x + pos_emb


def _run_case(key, *, B, C, P, IMG, DIM, tile_m):
    nP = (IMG // P) ** 2
    S = nP + 1
    k1, k2, k3, k4, k5 = jax.random.split(key, 5)
    pixel_values = jax.random.normal(k1, (B, C, IMG, IMG), jnp.float32)
    conv_w = 0.02 * jax.random.normal(k2, (DIM, C, P, P), jnp.float32)
    conv_b = 0.01 * jax.random.normal(k3, (DIM,), jnp.float32)
    cls_token = 0.02 * jax.random.normal(k4, (1, 1, DIM), jnp.float32)
    pos_emb = 0.02 * jax.random.normal(k5, (1, S, DIM), jnp.float32)

    fn = jax.jit(functools.partial(dino2_embeddings, patch_size=P,
                                   tile_m=tile_m))
    out = jax.block_until_ready(fn(pixel_values, conv_w, conv_b,
                                   cls_token, pos_emb))

    ref = _reference(pixel_values, conv_w, conv_b, cls_token, pos_emb, P)
    assert out.shape == (B, S, DIM), out.shape
    # bf16 matmul inputs + bf16 output store (f32 accumulation) -> compare with
    # a loosened tolerance against the exact f32 reference.
    assert jnp.allclose(out.astype(jnp.float32), ref, atol=2e-2, rtol=2e-2), \
        float(jnp.max(jnp.abs(out.astype(jnp.float32) - ref)))


if __name__ == "__main__":
    key = jax.random.PRNGKey(0)
    k_a, k_b = jax.random.split(key)

    # Case A: small shapes consistent with the module (patch_size=14),
    # image 28x28 -> 2x2 = 4 patches + cls, dim=128 (lane-dense), B=2.
    # S=5 <= tile_m, so the whole sequence is one tile.
    _run_case(k_a, B=2, C=3, P=14, IMG=28, DIM=128, tile_m=512)

    # Case B: partial-tail tile (S % TM != 0): image 70x70 -> 5x5 = 25 patches
    # + cls = 26 rows, tile_m=16 -> tiles of 16 with a 10-row masked tail.
    _run_case(k_b, B=2, C=3, P=14, IMG=70, DIM=256, tile_m=16)

    print("KERNEL_OK")
</pallas_src>

<mosaic_0001>
module attributes {stable_mosaic.version = 11 : i64} {
  func.func @_embed_kernel(%arg0: i32, %arg1: i32, %arg2: memref<1x5x588xbf16, #tpu.memory_space<vmem>>, %arg3: memref<588x128xbf16, #tpu.memory_space<vmem>>, %arg4: memref<5x128xf32, #tpu.memory_space<vmem>>, %arg5: memref<1x5x128xbf16, #tpu.memory_space<vmem>>) attributes {dimension_semantics = [#tpu.dimension_semantics<parallel>, #tpu.dimension_semantics<parallel>], iteration_bounds = array<i64: 1, 2>, scalar_prefetch = 0 : i64, scratch_operands = 0 : i64, tpu.core_type = #tpu.core_type<tc>, window_params = [{transform_indices = @transform_0, window_bounds = array<i64: 1, 5, 588>}, {pipeline_mode = #tpu.pipeline_mode<synchronous>, transform_indices = @transform_1, window_bounds = array<i64: 588, 128>}, {transform_indices = @transform_2, window_bounds = array<i64: 5, 128>}, {transform_indices = @transform_3, window_bounds = array<i64: 1, 5, 128>}]} {
    %c0 = arith.constant 0 : index
    %c0_0 = arith.constant 0 : index
    %c0_1 = arith.constant 0 : index
    %0 = vector.load %arg2[%c0, %c0_0, %c0_1] : memref<1x5x588xbf16, #tpu.memory_space<vmem>>, vector<1x5x588xbf16>
    %1 = vector.shape_cast %0 : vector<1x5x588xbf16> to vector<5x588xbf16>
    %c0_2 = arith.constant 0 : index
    %c0_3 = arith.constant 0 : index
    %2 = vector.load %arg3[%c0_2, %c0_3] : memref<588x128xbf16, #tpu.memory_space<vmem>>, vector<588x128xbf16>
    %cst = arith.constant dense<0.000000e+00> : vector<5x128xf32>
    %3 = tpu.matmul %1, %2, %cst {dimension_numbers = #tpu.dot_dimension_numbers<[1], [0], [0], [1], [0, 0, 1, 1], [], []>} : vector<5x588xbf16>, vector<588x128xbf16>, vector<5x128xf32> -> vector<5x128xf32>
    %c0_4 = arith.constant 0 : index
    %c0_5 = arith.constant 0 : index
    %4 = vector.load %arg4[%c0_4, %c0_5] : memref<5x128xf32, #tpu.memory_space<vmem>>, vector<5x128xf32>
    %5 = arith.addf %3, %4 : vector<5x128xf32>
    %6 = arith.truncf %5 : vector<5x128xf32> to vector<5x128xbf16>
    %c0_6 = arith.constant 0 : index
    %c0_7 = arith.constant 0 : index
    %c0_8 = arith.constant 0 : index
    %7 = vector.load %arg5[%c0_6, %c0_7, %c0_8] : memref<1x5x128xbf16, #tpu.memory_space<vmem>>, vector<1x5x128xbf16>
    %8 = vector.shape_cast %7 : vector<1x5x128xbf16> to vector<5x128xbf16>
    %9 = vector.shape_cast %6 : vector<5x128xbf16> to vector<1x5x128xbf16>
    tpu.vector_store %arg5[%c0_6, %c0_7, %c0_8], %9 {strides = array<i32>} : memref<1x5x128xbf16, #tpu.memory_space<vmem>>, vector<1x5x128xbf16>,
    return
  }
  func.func @transform_0(%arg0: i32, %arg1: i32) -> (i32, i32, i32) {
    %c0_i32 = arith.constant 0 : i32
    %c0_i32_0 = arith.constant 0 : i32
    return %arg1, %arg0, %c0_i32 : i32, i32, i32
  }
  func.func @transform_1(%arg0: i32, %arg1: i32) -> (i32, i32) {
    %c0_i32 = arith.constant 0 : i32
    %c0_i32_0 = arith.constant 0 : i32
    %c0_i32_1 = arith.constant 0 : i32
    return %c0_i32, %c0_i32_0 : i32, i32
  }
  func.func @transform_2(%arg0: i32, %arg1: i32) -> (i32, i32) {
    %c0_i32 = arith.constant 0 : i32
    %c0_i32_0 = arith.constant 0 : i32
    return %arg0, %c0_i32 : i32, i32
  }
  func.func @transform_3(%arg0: i32, %arg1: i32) -> (i32, i32, i32) {
    %c0_i32 = arith.constant 0 : i32
    %c0_i32_0 = arith.constant 0 : i32
    return %arg1, %arg0, %c0_i32 : i32, i32, i32
  }
}

</mosaic_0001>

<bundles_post_ra>
// kernel: dino2_embeddings.1
= control target key start
LH: loop header
LB: loop body
LE: loop exit
PB: predicated region body
PF: predicated region fallthrough
CT: control target
= control target key end

     0   :  { %s978_s12 = smov 0   ;;  %s980_s13 = smov 0   ;;  %s1141_s0 = inlined_call_operand.vmem [shape: bf16[2,5,588], index: 0, kind: input, shape index: {}]   ;;  %s1142_s1 = inlined_call_operand.vmem [shape: bf16[588,128], index: 1, kind: input, shape index: {}]   ;;  %s1143_s2 = inlined_call_operand.vmem [shape: f32[5,128], index: 2, kind: input, shape index: {}]   ;;  %s1144_s3 = inlined_call_operand.vmem [shape: bf16[2,5,128], index: 3, kind: output, shape index: {}]  }
   0x1   :  { %s982_s14 = smov 0  }
   0x2 LB: > { %s22_s15 = sadd.s32 1, %s952_s13  ;;  %p718_p0 = scmp.ge.s32.totalorder %s956_s14, 1  ;;  %s956_s14 = sphi %s982_s14, %s13_s14   ;;  %s952_s13 = sphi %s980_s13, %s1146_s13   ;;  %s948_s12 = sphi %s978_s12, %s1145_s12  }
   0x3   : > { %p23_p1 = scmp.ge.s32.totalorder %s22_s15, 2  ;;  %p166_p2 = scmp.lt.s32.totalorder %s956_s14, 3 }
   0x5   : > { %s1148_s15 = smov (%p23_p1, %s22_s15), 0  ;;  %p167_p3 = pnand %p718_p0, %p166_p2 }
   0x6   : > { %p200_p4 = scmp.lt.s32.totalorder (!%p167_p3), %s948_s12, 1 }
   0x7   : > { %170 = sbr.rel (%p167_p3) target bundleno = 198 (0xc6), region = 32 }
   0xc   : > { %v879_v0 = vld [vmem:[%s1142_s1 + $0x38] sm:$0xff]  ;;  %v878_v4 = vld [vmem:[%s1142_s1 + $0x30] sm:$0xff]  ;;  %v877_v8 = vld [vmem:[%s1142_s1 + $0x28] sm:$0xff]  ;;  %s1150_s12 = smov (!%p200_p4, %s948_s12), 1  ;;  %vm541_vm0 = vcmask 1045504   ;;  %vm537_vm1 = vcmask 621568  }
   0xd   : > { %v895_v1 = vld [vmem:[%s1142_s1 + $0xb8] sm:$0xff]  ;;  %545 = vmatpush.bf16.msra.mxu0 %v879_v0  ;;  %v894_v5 = vld [vmem:[%s1142_s1 + $0xb0] sm:$0xff]  ;;  %v893_v9 = vld [vmem:[%s1142_s1 + $0xa8] sm:$0xff]  ;;  %s909_s6 = smul.u32 20, %s1150_s12  ;;  %vm611_vm2 = vcmask 1042432  }
   0xe   : > { %v903_v2 = vld [vmem:[%s1142_s1 + $0xf8] sm:$0xff]  ;;  %571 = vmatpush.bf16.msra.mxu2 %v895_v1  ;;  %v902_v6 = vld [vmem:[%s1142_s1 + $0xf0] sm:$0xff]  ;;  %v901_v10 = vld [vmem:[%s1142_s1 + $0xe8] sm:$0xff]  ;;  %vm612_vm3 = vsmask.f32 2304 }
   0xf   : > { %v887_v3 = vld [vmem:[%s1142_s1 + $0x78] sm:$0xff]  ;;  %584 = vmatpush.bf16.msra.mxu3 %v903_v2  ;;  %v886_v7 = vld [vmem:[%s1142_s1 + $0x70] sm:$0xff]  ;;  %v885_v11 = vld [vmem:[%s1142_s1 + $0x68] sm:$0xff]  ;;  %s1078_s21 = scalar_lea.vmem %s1141_s0, %s909_s6 }
  0x10   : > { %558 = vmatpush.bf16.msra.mxu1 %v887_v3  ;;  %v876_v12 = vld [vmem:[%s1142_s1 + $0x20] sm:$0xff]  ;;  %v875_v16 = vld [vmem:[%s1142_s1 + $0x18] sm:$0xff]  ;;  %v874_v20 = vld [vmem:[%s1142_s1 + $0x10] sm:$0xff] }
  0x11   : > { %546 = vmatpush.bf16.msra.mxu0 %v878_v4  ;;  %v892_v13 = vld [vmem:[%s1142_s1 + $0xa0] sm:$0xff]  ;;  %v891_v17 = vld [vmem:[%s1142_s1 + $0x98] sm:$0xff]  ;;  %v890_v21 = vld [vmem:[%s1142_s1 + $0x90] sm:$0xff] }
  0x12   : > { %572 = vmatpush.bf16.msra.mxu2 %v894_v5  ;;  %v900_v14 = vld [vmem:[%s1142_s1 + $0xe0] sm:$0xff]  ;;  %v899_v18 = vld [vmem:[%s1142_s1 + $0xd8] sm:$0xff]  ;;  %v898_v22 = vld [vmem:[%s1142_s1 + $0xd0] sm:$0xff] }
  0x13   : > { %585 = vmatpush.bf16.msra.mxu3 %v902_v6  ;;  %v884_v15 = vld [vmem:[%s1142_s1 + $0x60] sm:$0xff]  ;;  %v883_v19 = vld [vmem:[%s1142_s1 + $0x58] sm:$0xff]  ;;  %v882_v23 = vld [vmem:[%s1142_s1 + $0x50] sm:$0xff] }
  0x14   : > { %559 = vmatpush.bf16.msra.mxu1 %v886_v7  ;;  %v873_v24 = vld [vmem:[%s1142_s1 + $0x8] sm:$0xff]  ;;  %v867_v25 = vld [vmem:[%s1142_s1 + $0x120] sm:$0xf]  ;;  %v908_v26 = vld [vmem:[%s1142_s1 + $0x120] sm:$0x30] }
  0x15   : > { %547 = vmatpush.bf16.msra.mxu0 %v877_v8  ;;  %v889_v27 = vld [vmem:[%s1142_s1 + $0x88] sm:$0xff]  ;;  %v221_v28 = vld [vmem:[%s1078_s21] sm:$0x77]  ;;  %v868_v32 = vor.u32 %v908_v26, %v867_v25  ;;  %v907_v45 = vld [vmem:[%s1142_s1 + $0x118] sm:$0xff] }
  0x16   : > { %573 = vmatpush.bf16.msra.mxu2 %v893_v9  ;;  %v222_v29 = vld [vmem:[%s1078_s21 + $0x8] sm:$0x77]  ;;  %v302_v33 = vunpack.c.l.b16 %v221_v28  ;;  %v872_v35 = vld [vmem:[%s1142_s1] sm:$0xff]  ;;  %v303_v39 = vunpack.c.h.b16 %v221_v28  ;;  %v906_v47 = vld [vmem:[%s1142_s1 + $0x110] sm:$0xff] }
  0x17   : > { %586 = vmatpush.bf16.msra.mxu3 %v901_v10  ;;  %v897_v30 = vld [vmem:[%s1142_s1 + $0xc8] sm:$0xff]  ;;  %v304_v34 = vunpack.c.l.b16 %v222_v29  ;;  %v888_v36 = vld [vmem:[%s1142_s1 + $0x80] sm:$0xff]  ;;  %v305_v37 = vunpack.c.h.b16 %v222_v29  ;;  %v543_v40 = vsel %vm541_vm0, %v868_v32, 0  ;;  %v223_v48 = vld [vmem:[%s1078_s21 + $0x10] sm:$0x7]  ;;  %s720_s21 = sshll.u32 %s1150_s12, 2 }
  0x18   : > { %560 = vmatpush.bf16.msra.mxu1 %v885_v11  ;;  %v881_v31 = vld [vmem:[%s1142_s1 + $0x48] sm:$0xff]  ;;  %v896_v38 = vld [vmem:[%s1142_s1 + $0xc0] sm:$0xff]  ;;  %v307_v42 = vpack.c.b16 %v302_v33, %v302_v33  ;;  %v308_v46 = vpack.c.b16 %v303_v39, %v303_v39  ;;  %v306_v50 = vunpack.c.l.b16 %v223_v48  ;;  %s219_s5 = scalar_lea.vmem %s1144_s3, %s720_s21  ;;  %vm613_vm4 = vmand %vm611_vm2, %vm612_vm3 }
  0x19   : > { %548 = vmatpush.bf16.msra.mxu0 %v876_v12  ;;  %v880_v41 = vld [vmem:[%s1142_s1 + $0x40] sm:$0xff]  ;;  %v309_v43 = vpack.c.b16 %v304_v34, %v304_v34  ;;  %v310_v44 = vpack.c.b16 %v305_v37, %v305_v37  ;;  %v905_v49 = vld [vmem:[%s1142_s1 + $0x108] sm:$0xff] }
  0x1a   : > { %574 = vmatpush.bf16.msra.mxu2 %v892_v13  ;;  %v904_v51 = vld [vmem:[%s1142_s1 + $0x100] sm:$0xff]  ;;  %v311_v52 = vpack.c.b16 %v306_v50, %v306_v50 }
  0x1b   : > { %587 = vmatpush.bf16.msra.mxu3 %v900_v14  ;;  %v298_v54 = vld [vmem:[%s1143_s2] sm:$0x1f] }
  0x1c   : > { %561 = vmatpush.bf16.msra.mxu1 %v884_v15  ;;  %v614_v4 = vld [vmem:[%s219_s5] sm:$0x7] }
  0x1d   : > { %549 = vmatpush.bf16.msra.mxu0 %v875_v16 }
  0x1e   : > { %575 = vmatpush.bf16.msra.mxu2 %v891_v17 }
  0x1f   : > { %588 = vmatpush.bf16.msra.mxu3 %v899_v18 }
  0x20   : > { %562 = vmatpush.bf16.msra.mxu1 %v883_v19 }
  0x21   : > { %550 = vmatpush.bf16.msra.mxu0 %v874_v20 }
  0x22   : > { %576 = vmatpush.bf16.msra.mxu2 %v890_v21 }
  0x23   : > { %589 = vmatpush.bf16.msra.mxu3 %v898_v22 }
  0x24   : > { %563 = vmatpush.bf16.msra.mxu1 %v882_v23 }
  0x25   : > { %551 = vmatpush.bf16.msra.mxu0 %v873_v24 }
  0x26   : > { %577 = vmatpush.bf16.msra.mxu2 %v889_v27 }
  0x27   : > { %590 = vmatpush.bf16.msra.mxu3 %v897_v30 }
  0x28   : > { %564 = vmatpush.bf16.msra.mxu1 %v881_v31 }
  0x29   : > { %552 = vmatpush.bf16.msra.mxu0 %v872_v35 }
  0x2a   : > { %578 = vmatpush.bf16.msra.mxu2 %v888_v36 }
  0x2b   : > { %591 = vmatpush.bf16.msra.mxu3 %v896_v38 }
  0x2c   : > { %565 = vmatpush.bf16.msra.mxu1 %v880_v41  ;;  %553 = vmatmul.bf16.vlgmr.msra.gmra.mxu0 %v307_v42 }
  0x2d   : > { %600 = vmatpush.bf16.msrb.mxu0 %v543_v40  ;;  %579 = vmatmul.bf16.vlgmr.msra.gmra.mxu2 %v309_v43 }
  0x2e   : > { %592 = vmatmul.bf16.vlgmr.msra.gmra.mxu3 %v310_v44 }
  0x2f   : > { %566 = vmatmul.bf16.vlgmr.msra.gmra.mxu1 %v308_v46 }
  0x31   : > { %601 = vmatpush.bf16.msrb.mxu0 %v907_v45 }
  0x35   : > { %602 = vmatpush.bf16.msrb.mxu0 %v906_v47 }
  0x39   : > { %603 = vmatpush.bf16.msrb.mxu0 %v905_v49 }
  0x3d   : > { %604 = vmatpush.bf16.msrb.mxu0 %v904_v51 }
  0x40   : > { %869 = vmatmul.msk.bf16.vlgmr.msrb.gmra.mxu0 %vm537_vm1, %v311_v52 }
  0xa9   : > { %v554_v53 = vpop.f32.mrf.mxu0 }
  0xaa   : > { %v555_v56 = vadd.f32 %v554_v53, %v298_v54 }
  0xac   : > { %v567_v55 = vpop.f32.mrf.mxu1 }
  0xad   : > { %v568_v59 = vadd.f32 %v567_v55, %v555_v56 }
  0xb0   : > { %v580_v57 = vpop.f32.mrf.mxu2 }
  0xb1   : > { %v593_v58 = vpop.f32.mrf.mxu3  ;;  %v556_v60 = vpop.f32.mrf.mxu0  ;;  %v581_v62 = vadd.f32 %v580_v57, %v568_v59 }
  0xb3   : > { %v594_v1 = vadd.f32 %v593_v58, %v581_v62 }
  0xb4   : > { %v569_v61 = vpop.f32.mrf.mxu1 }
  0xb8   : > { %v582_v63 = vpop.f32.mrf.mxu2 }
  0xb9   : > { %v595_v0 = vpop.f32.mrf.mxu3 }
  0xbd   : > { %v606_v2 = vpop.f32.mrf.mxu0 }
  0xbe   : > { %v607_v3 = vadd.f32 %v606_v2, %v594_v1 }
  0xc0   : > { %v610_v5 = vpack.c.bf16 %v607_v3, %v607_v3 }
  0xc2   : > { %v615_v6 = vsel %vm613_vm4, %v610_v5, %v614_v4 }
  0xc3   : > { %616 = vst [vmem:[%s219_s5] sm:$0x7] %v615_v6 }
  0xc5   : > { %v608_v7 = vpop.f32.mrf.mxu0 }
  0xc6 PF: > { %s13_s14 = sadd.s32 1, %s956_s14   ;;  %s1145_s12 = smov %s952_s13 }
  0xc7   : > { %p10_p5 = scmp.ge.s32.totalorder %s13_s14, 4   ;;  %s1146_s13 = smov %s1148_s15 }
  0xc9   :  { %12 = sbr.rel (!%p10_p5) target bundleno = 2 (0x2), region = 65 }

</bundles_post_ra>
